<compile_context>
chip_gen: v5e
topology: v5e:2x2
jax: 0.10.0
libtpu: 0.0.40
codegen_flags: <defaults>
</compile_context>

<pallas_src>
import jax
import jax.numpy as jnp
from jax.experimental import pallas as pl
from jax.experimental.pallas import tpu as pltpu


def _round_up(x: int, m: int) -> int:
    return ((x + m - 1) // m) * m


def _pref_learner_kernel(u_ref, i_ref, e_ref, wt_ref, b_ref, o_ref):
    # Fused elementwise triple-product (VPU) + matmul (MXU, f32 acc) + bias add.
    x = u_ref[...] * i_ref[...] * e_ref[...]                  # [TB, D]
    y = jnp.dot(x, wt_ref[...],                               # [TB, D] @ [D, Dout]
                preferred_element_type=jnp.float32)
    o_ref[...] = (y + b_ref[...].astype(jnp.float32)).astype(o_ref.dtype)


def prepare_params(weight, bias):
    """One-time parameter prep (outside the hot path).

    weight: [D_out, D_in] (PyTorch nn.Linear layout), bias: [D_out].
    Returns (w_t, b2d): transposed weight [D_in, D_out] and 2-D bias [1, D_out].
    No lane padding: for small d_out padding would quadruple output HBM writes;
    the full-last-dim output block is legal and the masked store cost is hidden
    in store-slot slack on this DMA-bound kernel.
    """
    w_t = jnp.asarray(weight).T            # [D_in, D_out]
    b2d = jnp.asarray(bias).reshape(1, -1)  # [1, D_out]
    return w_t, b2d


def _auto_block_b(B, D, d_out, in_isz, out_isz, vmem_budget_bytes):
    """Pick the batch tile from a VMEM budget.

    Each input row occupies ceil(D/128)*128 lanes in VMEM (lane padding), and
    Pallas double-buffers the 3 input streams + output.  Cap at 4096 rows
    (diminishing returns past a few thousand) and at B (rounded to a sublane
    multiple).
    """
    d_pad = _round_up(D, 128)
    dout_pad = _round_up(d_out, 128)
    per_row = 2 * (3 * d_pad * in_isz + dout_pad * out_isz)   # 2 buffers/stream
    # Leave ~2 MiB headroom for the resident weight/bias and compiler scratch.
    budget = max(vmem_budget_bytes - (2 << 20), 1 << 20)
    tb = budget // per_row
    tb = min(tb, 4096)
    tb = max(8, (tb // 8) * 8)
    tb = min(tb, _round_up(B, 8))
    return int(tb)


def inner_product_linear_trans_forward(users_embed, items_embed, ens_embed,
                                       w_t, b2d, *,
                                       block_b=None,
                                       stream_dtype=None,
                                       out_dtype=None,
                                       vmem_budget_bytes=32 << 20):
    """users/items/ens: [B, D_in]; w_t: [D_in, D_out]; b2d: [1, D_out].

    stream_dtype: if set (e.g. jnp.bfloat16), embeddings are cast before the
      kernel to halve HBM read bytes; accumulation stays f32 on the MXU.
    out_dtype: explicit output dtype (defaults to users_embed.dtype).
    vmem_budget_bytes: working-set target used to size the batch tile; the
      default 32 MiB fits v5e/v6e (128 MiB physical) and v7x (64 MiB per TC).
      The per-call vmem_limit_bytes is set from the actual working set.
    """
    B, D = users_embed.shape
    d_in, d_out = w_t.shape
    assert d_in == D

    if stream_dtype is not None:
        users_embed = users_embed.astype(stream_dtype)
        items_embed = items_embed.astype(stream_dtype)
        ens_embed = ens_embed.astype(stream_dtype)
    if out_dtype is None:
        out_dtype = users_embed.dtype

    in_isz = jnp.dtype(users_embed.dtype).itemsize
    out_isz = jnp.dtype(out_dtype).itemsize
    w_isz = jnp.dtype(w_t.dtype).itemsize
    b_isz = jnp.dtype(b2d.dtype).itemsize

    if block_b is None:
        TB = _auto_block_b(B, D, d_out, in_isz, out_isz, vmem_budget_bytes)
    else:
        TB = max(8, _round_up(min(block_b, _round_up(B, 8)), 8))

    # Explicit scoped-VMEM limit from the actual working set (double-buffered
    # tiles + resident, double-buffered weight/bias) plus headroom.
    d_pad = _round_up(D, 128)
    dout_pad = _round_up(d_out, 128)
    tile_bytes = TB * (3 * d_pad * in_isz + dout_pad * out_isz)
    param_bytes = (_round_up(D, 8) * dout_pad * w_isz
                   + 8 * dout_pad * b_isz)
    vmem_limit = min(2 * tile_bytes + 2 * param_bytes + (4 << 20), 100 << 20)

    grid = (pl.cdiv(B, TB),)   # no jnp.pad: partial last block is masked.

    out = pl.pallas_call(
        _pref_learner_kernel,
        out_shape=jax.ShapeDtypeStruct((B, d_out), out_dtype),
        grid=grid,
        in_specs=[
            pl.BlockSpec((TB, D), lambda i: (i, 0)),       # users tile
            pl.BlockSpec((TB, D), lambda i: (i, 0)),       # items tile
            pl.BlockSpec((TB, D), lambda i: (i, 0)),       # ens tile
            pl.BlockSpec((D, d_out), lambda i: (0, 0)),    # weight: VMEM-resident
            pl.BlockSpec((1, d_out), lambda i: (0, 0)),    # bias:   VMEM-resident
        ],
        out_specs=pl.BlockSpec((TB, d_out), lambda i: (i, 0)),
        compiler_params=pltpu.CompilerParams(
            dimension_semantics=("parallel",),             # megacore shard on v7x
            vmem_limit_bytes=int(vmem_limit)),
        cost_estimate=pl.CostEstimate(
            flops=2 * B * D * d_out + 2 * B * D,
            transcendentals=0,
            bytes_accessed=(3 * B * D * in_isz
                            + D * d_out * w_isz
                            + d_out * b_isz
                            + B * d_out * out_isz),
        ),
    )(users_embed, items_embed, ens_embed, w_t, b2d)

    return out


def init_params(key, factor_dim):
    """Deterministic init matching the module's __init__ shapes.

    weight: [factor_dim, factor_dim], xavier_uniform_ (gain=1)
    bias:   [factor_dim], PyTorch Linear default U(-1/sqrt(fan_in), 1/sqrt(fan_in))
    """
    k_w, k_b = jax.random.split(key)
    fan_in = fan_out = factor_dim
    xavier_bound = (6.0 / (fan_in + fan_out)) ** 0.5
    weight = jax.random.uniform(k_w, (factor_dim, factor_dim),
                                minval=-xavier_bound, maxval=xavier_bound,
                                dtype=jnp.float32)
    bias_bound = 1.0 / (fan_in ** 0.5)
    bias = jax.random.uniform(k_b, (factor_dim,),
                              minval=-bias_bound, maxval=bias_bound,
                              dtype=jnp.float32)
    return weight, bias


# TODO(synk): get_L1_reg / get_L2_reg are trivial full-array norms over the
# parameters (not part of forward); implement in plain JAX if needed.


if __name__ == "__main__":
    key = jax.random.PRNGKey(0)
    B, D = 8, 32  # batch, factor_dim

    k_u, k_i, k_e, k_p = jax.random.split(key, 4)
    users_embed = jax.random.normal(k_u, (B, D), dtype=jnp.float32)
    items_embed = jax.random.normal(k_i, (B, D), dtype=jnp.float32)
    ens_embed = jax.random.normal(k_e, (B, D), dtype=jnp.float32)
    weight, bias = init_params(k_p, D)

    # One-time parameter prep (transpose) outside the hot path.
    w_t, b2d = prepare_params(weight, bias)

    # f32 path: strict reference check.
    out = inner_product_linear_trans_forward(users_embed, items_embed,
                                             ens_embed, w_t, b2d)
    out = jax.block_until_ready(out)

    ref = (users_embed * items_embed * ens_embed) @ weight.T + bias
    assert out.shape == (B, D)
    assert out.dtype == jnp.float32
    assert jnp.allclose(out, ref, atol=1e-5, rtol=1e-5)

    # bf16 streaming path (halves read bytes on the mem-bound kernel); f32
    # accumulation + explicit f32 output, loose tolerance vs the f32 reference.
    out_bf16 = inner_product_linear_trans_forward(
        users_embed, items_embed, ens_embed, w_t, b2d,
        stream_dtype=jnp.bfloat16, out_dtype=jnp.float32)
    out_bf16 = jax.block_until_ready(out_bf16)
    assert out_bf16.shape == (B, D)
    assert jnp.allclose(out_bf16, ref, atol=1e-1, rtol=1e-1)

    print("KERNEL_OK")
</pallas_src>

<mosaic_0001>
module attributes {stable_mosaic.version = 11 : i64} {
  func.func @_pref_learner_kernel(%arg0: i32, %arg1: memref<8x32xf32, #tpu.memory_space<vmem>>, %arg2: memref<8x32xf32, #tpu.memory_space<vmem>>, %arg3: memref<8x32xf32, #tpu.memory_space<vmem>>, %arg4: memref<32x32xf32, #tpu.memory_space<vmem>>, %arg5: memref<1x32xf32, #tpu.memory_space<vmem>>, %arg6: memref<8x32xf32, #tpu.memory_space<vmem>>) attributes {dimension_semantics = [#tpu.dimension_semantics<parallel>], iteration_bounds = array<i64: 1>, scalar_prefetch = 0 : i64, scratch_operands = 0 : i64, tpu.core_type = #tpu.core_type<tc>, window_params = [{transform_indices = @transform_0, window_bounds = array<i64: 8, 32>}, {transform_indices = @transform_1, window_bounds = array<i64: 8, 32>}, {transform_indices = @transform_2, window_bounds = array<i64: 8, 32>}, {pipeline_mode = #tpu.pipeline_mode<synchronous>, transform_indices = @transform_3, window_bounds = array<i64: 32, 32>}, {pipeline_mode = #tpu.pipeline_mode<synchronous>, transform_indices = @transform_4, window_bounds = array<i64: 1, 32>}, {transform_indices = @transform_5, window_bounds = array<i64: 8, 32>}]} {
    %c0 = arith.constant 0 : index
    %c0_0 = arith.constant 0 : index
    %0 = vector.load %arg1[%c0, %c0_0] : memref<8x32xf32, #tpu.memory_space<vmem>>, vector<8x32xf32>
    %c0_1 = arith.constant 0 : index
    %c0_2 = arith.constant 0 : index
    %1 = vector.load %arg2[%c0_1, %c0_2] : memref<8x32xf32, #tpu.memory_space<vmem>>, vector<8x32xf32>
    %2 = arith.mulf %0, %1 : vector<8x32xf32>
    %c0_3 = arith.constant 0 : index
    %c0_4 = arith.constant 0 : index
    %3 = vector.load %arg3[%c0_3, %c0_4] : memref<8x32xf32, #tpu.memory_space<vmem>>, vector<8x32xf32>
    %4 = arith.mulf %2, %3 : vector<8x32xf32>
    %c0_5 = arith.constant 0 : index
    %c0_6 = arith.constant 0 : index
    %5 = vector.load %arg4[%c0_5, %c0_6] : memref<32x32xf32, #tpu.memory_space<vmem>>, vector<32x32xf32>
    %cst = arith.constant dense<0.000000e+00> : vector<8x32xf32>
    %6 = tpu.matmul %4, %5, %cst {dimension_numbers = #tpu.dot_dimension_numbers<[1], [0], [0], [1], [0, 0, 1, 1], [], []>} : vector<8x32xf32>, vector<32x32xf32>, vector<8x32xf32> -> vector<8x32xf32>
    %c0_7 = arith.constant 0 : index
    %c0_8 = arith.constant 0 : index
    %7 = vector.load %arg5[%c0_7, %c0_8] : memref<1x32xf32, #tpu.memory_space<vmem>>, vector<1x32xf32>
    %8 = vector.broadcast %7 : vector<1x32xf32> to vector<8x32xf32>
    %9 = arith.addf %6, %8 : vector<8x32xf32>
    %c0_9 = arith.constant 0 : index
    %c0_10 = arith.constant 0 : index
    %10 = vector.load %arg6[%c0_9, %c0_10] : memref<8x32xf32, #tpu.memory_space<vmem>>, vector<8x32xf32>
    tpu.vector_store %arg6[%c0_9, %c0_10], %9 {strides = array<i32>} : memref<8x32xf32, #tpu.memory_space<vmem>>, vector<8x32xf32>,
    return
  }
  func.func @transform_0(%arg0: i32) -> (i32, i32) {
    %c0_i32 = arith.constant 0 : i32
    %c0_i32_0 = arith.constant 0 : i32
    return %arg0, %c0_i32 : i32, i32
  }
  func.func @transform_1(%arg0: i32) -> (i32, i32) {
    %c0_i32 = arith.constant 0 : i32
    %c0_i32_0 = arith.constant 0 : i32
    return %arg0, %c0_i32 : i32, i32
  }
  func.func @transform_2(%arg0: i32) -> (i32, i32) {
    %c0_i32 = arith.constant 0 : i32
    %c0_i32_0 = arith.constant 0 : i32
    return %arg0, %c0_i32 : i32, i32
  }
  func.func @transform_3(%arg0: i32) -> (i32, i32) {
    %c0_i32 = arith.constant 0 : i32
    %c0_i32_0 = arith.constant 0 : i32
    %c0_i32_1 = arith.constant 0 : i32
    return %c0_i32, %c0_i32_0 : i32, i32
  }
  func.func @transform_4(%arg0: i32) -> (i32, i32) {
    %c0_i32 = arith.constant 0 : i32
    %c0_i32_0 = arith.constant 0 : i32
    %c0_i32_1 = arith.constant 0 : i32
    return %c0_i32, %c0_i32_0 : i32, i32
  }
  func.func @transform_5(%arg0: i32) -> (i32, i32) {
    %c0_i32 = arith.constant 0 : i32
    %c0_i32_0 = arith.constant 0 : i32
    return %arg0, %c0_i32 : i32, i32
  }
}

</mosaic_0001>

<bundles_post_ra>
// kernel: tpu_custom_call.1
= control target key start
LH: loop header
LB: loop body
LE: loop exit
PB: predicated region body
PF: predicated region fallthrough
CT: control target
= control target key end

     0   :  { %10 = vsyncpa [#allocation3], 0  ;;  %s327_s0 = inlined_call_operand.hbm [shape: f32[8,32], index: 0, kind: input, shape index: {}]   ;;  %s328_s1 = inlined_call_operand.hbm [shape: f32[8,32], index: 1, kind: input, shape index: {}]   ;;  %s329_s2 = inlined_call_operand.hbm [shape: f32[8,32], index: 2, kind: input, shape index: {}]   ;;  %s330_s3 = inlined_call_operand.hbm [shape: f32[32,32], index: 3, kind: input, shape index: {}]   ;;  %s331_s4 = inlined_call_operand.vmem [shape: f32[1,32], index: 4, kind: input, shape index: {}]   ;;  %s332_s5 = inlined_call_operand.hbm [shape: f32[8,32], index: 5, kind: output, shape index: {}]  }
   0x1   :  { %11 = vsyncpa [#allocation6], 0 }
   0x2   :  { %12 = vsyncpa [#allocation9], 0  ;;  %s30_s20 = sshll.u32 %s328_s1, 4  ;;  %s31_s20 = int_to_ptr.hbm [resolvable:$true] %s30_s20 }
   0x3   :  { %13 = vsyncpa [#allocation4], 0  ;;  %s272_s21 = smov [#allocation5]   ;;  %s19_s25 = sshll.u32 %s327_s0, 4  ;;  %s20_s25 = int_to_ptr.hbm [resolvable:$true] %s19_s25 }
   0x4   :  { %s32_s22 = sshll.u32 %s272_s21, 4  ;;  %s273_s26 = smov [#allocation2]   ;;  %s33_s22 = int_to_ptr.vmem [resolvable:$true] %s32_s22 }
   0x5   :  { %35 = dma.hbm_to_vmem [thread:$0]  %s31_s20, 128, %s33_s22, [#allocation6]  }
   0x6   :  { %s21_s27 = sshll.u32 %s273_s26, 4  ;;  %s41_s30 = sshll.u32 %s329_s2, 4  ;;  %s22_s27 = int_to_ptr.vmem [resolvable:$true] %s21_s27  ;;  %s42_s30 = int_to_ptr.hbm [resolvable:$true] %s41_s30 }
   0x7   :  { %24 = dma.hbm_to_vmem [thread:$0]  %s20_s25, 128, %s22_s27, [#allocation3]  }
   0x8   :  { %s51_s7 = sshll.u32 %s330_s3, 4  ;;  %s274_s8 = smov [#allocation7]   ;;  %s52_s7 = int_to_ptr.hbm [resolvable:$true] %s51_s7 }
   0x9   :  { %s43_s9 = sshll.u32 %s274_s8, 4  ;;  %s275_s0 = smov [#allocation8]   ;;  %s44_s9 = int_to_ptr.vmem [resolvable:$true] %s43_s9 }
   0xa   :  { %46 = dma.hbm_to_vmem [thread:$0]  %s42_s30, 128, %s44_s9, [#allocation6]  }
   0xb   :  { %s53_s10 = sshll.u32 %s275_s0, 4  ;;  %s276_s11 = smov 128   ;;  %s54_s10 = int_to_ptr.vmem [resolvable:$true] %s53_s10 }
   0xc   :  { %s277_s12 = smov 8  }
   0xd   :  { %59 = dma.hbm_to_vmem [thread:$0]  %s52_s7, 512, %s54_s10, [#allocation9], %s276_s11, %s276_s11, %s277_s12  }
   0xe   :  { %264 = dma.done.wait [#allocation3], 128  }
   0xf   :  { %265 = vsyncadd [#allocation3], 4294967168 }
  0x10   :  { %266 = dma.done.wait [#allocation6], 256  }
  0x11   :  { %267 = vsyncadd [#allocation6], 4294967040 }
  0x12   :  { %268 = dma.done.wait [#allocation9], 512  }
  0x13   :  { %269 = vsyncadd [#allocation9], 4294966784  ;;  %v86_v0 = vld [vmem:[#allocation8 + $0x18] sm:$0xff]  ;;  %v85_v1 = vld [vmem:[#allocation8 + $0x10] sm:$0xff]  ;;  %vm91_vm0 = vcmask 261120   ;;  %s278_s13 = smov [#allocation10]  }
  0x14   :  { %107 = vmatpush.msra.mxu0 %v86_v0  ;;  %v78_v2 = vld [vmem:[#allocation2] sm:$0xff]  ;;  %v79_v3 = vld [vmem:[#allocation5] sm:$0xff]  ;;  %v81_v6 = vld [vmem:[#allocation7] sm:$0xff]  ;;  %s121_s14 = sshll.u32 %s278_s13, 4  ;;  %s123_s17 = sshll.u32 %s332_s5, 4  ;;  %s122_s14 = int_to_ptr.vmem [resolvable:$true] %s121_s14  ;;  %s124_s17 = int_to_ptr.hbm [resolvable:$true] %s123_s17 }
  0x15   :  { %v84_v4 = vld [vmem:[#allocation8 + $0x8] sm:$0xff]  ;;  %v80_v5 = vmul.f32 %v79_v3, %v78_v2  ;;  %v83_v7 = vld [vmem:[#allocation8] sm:$0xff] }
  0x16   :  { %108 = vmatpush.msra.mxu0 %v85_v1  ;;  %v143_v9 = vld [vmem:[%s331_s4] ss:$0 sm:$0xff] }
  0x17   :  { %v82_v8 = vmul.f32 %v81_v6, %v80_v5 }
  0x18   :  { %109 = vmatpush.msra.mxu0 %v84_v4 }
  0x1a   :  { %110 = vmatpush.msra.mxu0 %v83_v7 }
  0x1b   :  { %135 = vmatmul.msk.f32.vlgmr.msra.gmra.mxu0 %vm91_vm0, %v82_v8 }
  0x98   :  { %v112_v10 = vpop.f32.mrf.mxu0 }
  0x99   :  { %v113_v11 = vadd.f32 %v143_v9, %v112_v10 }
  0x9b   :  { %115 = vst.msk [vmem:[#allocation10] sm:$0xff] %vm91_vm0, %v113_v11 }
  0x9c   :  { %126 = dma.vmem_to_hbm [thread:$0]  %s122_s14, 128, %s124_s17, [#allocation4]  }
  0x9d   :  { %270 = dma.done.wait [#allocation4], 128  }
  0x9e   :  { %271 = vsyncadd [#allocation4], 4294967168 }
  0x9f   :  { %131 = vsyncpa [#allocation3], 1 }
  0xa0   :  { %132 = vsyncpa [#allocation6], 1 }
  0xa1   :  { %133 = vsyncpa [#allocation9], 1 }
  0xa2   :  { %134 = vsyncpa [#allocation4], 1 }

</bundles_post_ra>
